<compile_context>
chip_gen: v5e
topology: v5e:2x2
jax: 0.10.0
libtpu: 0.0.40
codegen_flags: <defaults>
</compile_context>

<pallas_src>
import functools

import jax
import jax.numpy as jnp
from jax.experimental import pallas as pl
from jax.experimental.pallas import tpu as pltpu


def _round_up(x, m):
    return ((x + m - 1) // m) * m


# ---------------------------------------------------------------------------
# softmax attention-reduce path (alpha == 1): fully head-fused, no logits.
# ---------------------------------------------------------------------------
def _gat_softmax_kernel(z_ref, adj_ref, snorm_ref, wcat_ref, out_ref, *,
                        graph_norm):
    adj = adj_ref[...].astype(jnp.bfloat16)                 # int8 -> bf16 (VPU)
    # masked neighbour sum over all heads at once: bf16 x bf16 -> f32 MXU
    agg = jnp.dot(adj, z_ref[...], preferred_element_type=jnp.float32)  # (tm, H*d)
    if graph_norm:
        agg = agg * snorm_ref[...]
    agg = jnp.maximum(agg, 0.0)                             # per-head relu
    # fused concat-linear, lane-dense (128-padded) output store
    out_ref[...] = jnp.dot(agg, wcat_ref[...],
                           preferred_element_type=jnp.float32)


# ---------------------------------------------------------------------------
# tanh attention-reduce path: alpha = tanh(leaky_relu(e)) differs per head.
# Grid = (dst tiles [parallel], heads [arbitrary]); output accumulated.
# ---------------------------------------------------------------------------
def _gat_tanh_kernel(z_ref, adj_ref, snorm_ref, ed_ref, es_ref, wcat_ref,
                     out_ref, *, graph_norm, neg_slope):
    hh = pl.program_id(1)

    # e[dst, src] = leaky_relu(ed[dst] + es[src])   (precomputed scalars)
    e = ed_ref[0] + es_ref[0]                               # (tm,1)+(1,N)->(tm,N)
    e = jnp.where(e >= 0, e, neg_slope * e)                 # leaky_relu (VPU)
    alpha = jnp.tanh(e)                                     # EUP

    # masked aggregation: sum_src adj * alpha * z_src   (bf16 x bf16 -> f32 MXU)
    masked = (adj_ref[...].astype(jnp.float32) * alpha).astype(jnp.bfloat16)
    agg = jnp.dot(masked, z_ref[0], preferred_element_type=jnp.float32)  # (tm, d)
    if graph_norm:
        agg = agg * snorm_ref[...]
    agg = jnp.maximum(agg, 0.0)                             # relu

    # this head's slice of the fused concat-linear (lane-dense 128-wide)
    contrib = jnp.dot(agg, wcat_ref[0], preferred_element_type=jnp.float32)

    @pl.when(hh == 0)
    def _():
        out_ref[...] = jnp.zeros_like(out_ref)

    out_ref[...] += contrib


# ---------------------------------------------------------------------------
# wrapper
# ---------------------------------------------------------------------------
def _vmem_limit_bytes(tm, n_pad, H, d, out_pad, tanh_path):
    adj_stream = 2 * tm * n_pad                             # int8 double-buffered
    resident = n_pad * H * d * 2 + H * d * out_pad * 4      # Z (bf16) + Wcat (f32)
    out_tiles = 2 * tm * out_pad * 4
    temps = tm * n_pad * (12 if tanh_path else 4) + tm * H * d * 4
    est = adj_stream + resident + out_tiles + temps + (1 << 20)
    # above the 16/32 MiB scoped defaults, never above ~v5e/v6e physical;
    # demo sizes stay far below v7x's 64 MiB per-TC.
    return int(min(100 * (1 << 20), max(32 * (1 << 20), est)))


def gat_layer_forward(h, adj, snorm_n, w_fc, attn_w, w_concat, *,
                      att_reduce_fn='softmax', graph_norm=True, tm=None):
    """h: (N, in_dim); adj: (N, N), adj[dst, src] in {0,1}; snorm_n: (N, 1).
    w_fc: (H, d, in_dim); attn_w: (H, 1, 2d); w_concat: (out_dim, out_dim)."""
    N, in_dim = h.shape
    H, d, _ = w_fc.shape
    out_dim = w_concat.shape[0]
    assert out_dim == H * d

    # --- hardened tiling: tm multiple of 8, capped at 256; N padded to tm ---
    if tm is None:
        tm = 256
    tm = max(8, _round_up(min(tm, _round_up(N, 8)), 8))
    N_pad = _round_up(N, tm)
    out_pad = _round_up(out_dim, 128)                       # lane-dense output
    pad_n = N_pad - N

    h_pad = jnp.pad(h, ((0, pad_n), (0, 0)))
    adj_i8 = jnp.pad(adj, ((0, pad_n), (0, pad_n))).astype(jnp.int8)
    snorm_pad = jnp.pad(snorm_n, ((0, pad_n), (0, 0))).astype(jnp.float32)

    # Hoisted per-head projection Z (plain XLA matmul, f32 math).
    z_heads = jnp.einsum('ni,hdi->hnd', h_pad, w_fc)        # (H, N_pad, d) f32

    # Pre-transposed, zero-padded concat weight (lane-dense output columns).
    wcat_pad = jnp.zeros((H * d, out_pad), jnp.float32).at[:, :out_dim].set(
        w_concat.T)

    nt = N_pad // tm

    if att_reduce_fn == 'softmax':
        z_all = jnp.transpose(z_heads, (1, 0, 2)).reshape(
            N_pad, H * d).astype(jnp.bfloat16)              # head-fused, bf16
        cost = pl.CostEstimate(
            flops=2 * N_pad * N_pad * H * d + 2 * N_pad * H * d * out_pad,
            transcendentals=0,
            bytes_accessed=N_pad * N_pad + N_pad * H * d * 2
            + N_pad * out_pad * 4 + N_pad * 4)
        out = pl.pallas_call(
            functools.partial(_gat_softmax_kernel, graph_norm=graph_norm),
            out_shape=jax.ShapeDtypeStruct((N_pad, out_pad), jnp.float32),
            grid_spec=pltpu.PrefetchScalarGridSpec(
                num_scalar_prefetch=0,
                grid=(nt,),
                in_specs=[
                    pl.BlockSpec((N_pad, H * d), lambda i: (0, 0)),     # Z (resident)
                    pl.BlockSpec((tm, N_pad), lambda i: (i, 0)),        # adj tile
                    pl.BlockSpec((tm, 1), lambda i: (i, 0)),            # snorm tile
                    pl.BlockSpec((H * d, out_pad), lambda i: (0, 0)),   # Wcat^T pad
                ],
                out_specs=pl.BlockSpec((tm, out_pad), lambda i: (i, 0)),
            ),
            compiler_params=pltpu.CompilerParams(
                dimension_semantics=("parallel",),
                vmem_limit_bytes=_vmem_limit_bytes(tm, N_pad, H, d, out_pad, False)),
            cost_estimate=cost,
        )(z_all, adj_i8, snorm_pad, wcat_pad)
        return out[:N, :out_dim]

    # ---- 'tanh' branch -----------------------------------------------------
    a_src = attn_w[:, 0, :d]                                # (H, d)  (src half)
    a_dst = attn_w[:, 0, d:]                                # (H, d)  (dst half)
    ed = jnp.einsum('hnd,hd->hn', z_heads, a_dst)[..., None]    # (H, N_pad, 1)
    es = jnp.einsum('hnd,hd->hn', z_heads, a_src)[:, None, :]   # (H, 1, N_pad)
    z_bf = z_heads.astype(jnp.bfloat16)                     # (H, N_pad, d)
    wcat_heads = wcat_pad.reshape(H, d, out_pad)            # (H, d, out_pad)

    cost = pl.CostEstimate(
        flops=H * (2 * N_pad * N_pad * d + 2 * N_pad * d * out_pad
                   + 4 * N_pad * N_pad),
        transcendentals=H * N_pad * N_pad,
        bytes_accessed=N_pad * N_pad + H * N_pad * d * 2
        + 2 * H * N_pad * 4 + N_pad * out_pad * 4 + N_pad * 4)

    out = pl.pallas_call(
        functools.partial(_gat_tanh_kernel, graph_norm=graph_norm,
                          neg_slope=0.01),
        out_shape=jax.ShapeDtypeStruct((N_pad, out_pad), jnp.float32),
        grid_spec=pltpu.PrefetchScalarGridSpec(
            num_scalar_prefetch=0,
            grid=(nt, H),
            in_specs=[
                pl.BlockSpec((1, N_pad, d), lambda i, hh: (hh, 0, 0)),     # Z[h]
                pl.BlockSpec((tm, N_pad), lambda i, hh: (i, 0)),           # adj tile
                pl.BlockSpec((tm, 1), lambda i, hh: (i, 0)),               # snorm
                pl.BlockSpec((1, tm, 1), lambda i, hh: (hh, i, 0)),        # ed[h] tile
                pl.BlockSpec((1, 1, N_pad), lambda i, hh: (hh, 0, 0)),     # es[h]
                pl.BlockSpec((1, d, out_pad), lambda i, hh: (hh, 0, 0)),   # Wcat[h]
            ],
            out_specs=pl.BlockSpec((tm, out_pad), lambda i, hh: (i, 0)),
        ),
        compiler_params=pltpu.CompilerParams(
            dimension_semantics=("parallel", "arbitrary"),
            vmem_limit_bytes=_vmem_limit_bytes(tm, N_pad, H, d, out_pad, True)),
        cost_estimate=cost,
    )(z_bf, adj_i8, snorm_pad, ed, es, wcat_heads)
    return out[:N, :out_dim]


# ---------------------------------------------------------------------------
# pure-JAX reference (f32 math of the PyTorch forward, eval mode)
# ---------------------------------------------------------------------------
def _reference(h, adj, snorm_n, w_fc, attn_w, w_concat, att_reduce_fn,
               graph_norm):
    H, d, _ = w_fc.shape
    heads = []
    for hh in range(H):
        z = h @ w_fc[hh].T
        es = z @ attn_w[hh, 0, :d]          # src half of attn_fc weight
        ed = z @ attn_w[hh, 0, d:]          # dst half
        e = ed[:, None] + es[None, :]
        e = jnp.where(e >= 0, e, 0.01 * e)
        alpha = jnp.ones_like(e) if att_reduce_fn == 'softmax' else jnp.tanh(e)
        agg = (adj * alpha) @ z
        if graph_norm:
            agg = agg * snorm_n
        heads.append(jnp.maximum(agg, 0.0))
    hcat = jnp.concatenate(heads, axis=1)
    return hcat @ w_concat.T


if __name__ == "__main__":
    in_dim, out_dim, num_heads = 32, 32, 4
    d = out_dim // num_heads

    key = jax.random.PRNGKey(0)
    ok = True
    for N in (16, 20):          # 20 exercises the row-padding / tm hardening
        kh, kadj, kfc, kattn, kcat, key = jax.random.split(key, 6)

        h = jax.random.normal(kh, (N, in_dim), dtype=jnp.float32)
        adj = (jax.random.uniform(kadj, (N, N)) < 0.3).astype(jnp.float32)
        adj = jnp.maximum(adj, jnp.eye(N, dtype=jnp.float32))    # self loops
        snorm_n = jnp.full((N, 1), 1.0 / jnp.sqrt(N), dtype=jnp.float32)

        w_fc = 0.3 * jax.random.normal(kfc, (num_heads, d, in_dim), jnp.float32)
        attn_w = 0.3 * jax.random.normal(kattn, (num_heads, 1, 2 * d), jnp.float32)
        w_concat = 0.3 * jax.random.normal(kcat, (out_dim, out_dim), jnp.float32)

        out_sm = gat_layer_forward(h, adj, snorm_n, w_fc, attn_w, w_concat,
                                   att_reduce_fn='softmax', graph_norm=True)
        out_th = gat_layer_forward(h, adj, snorm_n, w_fc, attn_w, w_concat,
                                   att_reduce_fn='tanh', graph_norm=True)
        out_sm, out_th = jax.block_until_ready((out_sm, out_th))

        ref_sm = _reference(h, adj, snorm_n, w_fc, attn_w, w_concat,
                            'softmax', True)
        ref_th = _reference(h, adj, snorm_n, w_fc, attn_w, w_concat,
                            'tanh', True)

        ok &= out_sm.shape == (N, out_dim) and out_th.shape == (N, out_dim)
        # bf16 Z / masked-alpha in the aggregation matmul -> ~1% rel. difference
        ok &= bool(jnp.allclose(out_sm, ref_sm, rtol=5e-2, atol=5e-2))
        ok &= bool(jnp.allclose(out_th, ref_th, rtol=5e-2, atol=5e-2))

    assert ok, "kernel output mismatch vs reference"
    print("KERNEL_OK")
</pallas_src>

<mosaic_0001>
module attributes {stable_mosaic.version = 11 : i64} {
  func.func @_gat_softmax_kernel(%arg0: i32, %arg1: memref<16x32xbf16, #tpu.memory_space<vmem>>, %arg2: memref<16x16xi8, #tpu.memory_space<vmem>>, %arg3: memref<16x1xf32, #tpu.memory_space<vmem>>, %arg4: memref<32x128xf32, #tpu.memory_space<vmem>>, %arg5: memref<16x128xf32, #tpu.memory_space<vmem>>) attributes {dimension_semantics = [#tpu.dimension_semantics<parallel>], iteration_bounds = array<i64: 1>, scalar_prefetch = 0 : i64, scratch_operands = 0 : i64, tpu.core_type = #tpu.core_type<tc>, window_params = [{pipeline_mode = #tpu.pipeline_mode<synchronous>, transform_indices = @transform_0, window_bounds = array<i64: 16, 32>}, {transform_indices = @transform_1, window_bounds = array<i64: 16, 16>}, {transform_indices = @transform_2, window_bounds = array<i64: 16, 1>}, {pipeline_mode = #tpu.pipeline_mode<synchronous>, transform_indices = @transform_3, window_bounds = array<i64: 32, 128>}, {transform_indices = @transform_4, window_bounds = array<i64: 16, 128>}]} {
    %c0 = arith.constant 0 : index
    %c0_0 = arith.constant 0 : index
    %0 = vector.load %arg2[%c0, %c0_0] : memref<16x16xi8, #tpu.memory_space<vmem>>, vector<16x16xi8>
    %1 = arith.sitofp %0 : vector<16x16xi8> to vector<16x16xbf16>
    %c0_1 = arith.constant 0 : index
    %c0_2 = arith.constant 0 : index
    %2 = vector.load %arg1[%c0_1, %c0_2] : memref<16x32xbf16, #tpu.memory_space<vmem>>, vector<16x32xbf16>
    %cst = arith.constant dense<0.000000e+00> : vector<16x32xf32>
    %3 = tpu.matmul %1, %2, %cst {dimension_numbers = #tpu.dot_dimension_numbers<[1], [0], [0], [1], [0, 0, 1, 1], [], []>} : vector<16x16xbf16>, vector<16x32xbf16>, vector<16x32xf32> -> vector<16x32xf32>
    %c0_3 = arith.constant 0 : index
    %c0_4 = arith.constant 0 : index
    %4 = vector.load %arg3[%c0_3, %c0_4] : memref<16x1xf32, #tpu.memory_space<vmem>>, vector<16x1xf32>
    %5 = vector.broadcast %4 : vector<16x1xf32> to vector<16x32xf32>
    %6 = arith.mulf %3, %5 : vector<16x32xf32>
    %cst_5 = arith.constant 0.000000e+00 : f32
    %7 = vector.broadcast %cst_5 : f32 to vector<16x32xf32>
    %8 = arith.maximumf %6, %7 : vector<16x32xf32>
    %c0_6 = arith.constant 0 : index
    %c0_7 = arith.constant 0 : index
    %9 = vector.load %arg4[%c0_6, %c0_7] : memref<32x128xf32, #tpu.memory_space<vmem>>, vector<32x128xf32>
    %cst_8 = arith.constant dense<0.000000e+00> : vector<16x128xf32>
    %10 = tpu.matmul %8, %9, %cst_8 {dimension_numbers = #tpu.dot_dimension_numbers<[1], [0], [0], [1], [0, 0, 1, 1], [], []>} : vector<16x32xf32>, vector<32x128xf32>, vector<16x128xf32> -> vector<16x128xf32>
    %c0_9 = arith.constant 0 : index
    %c0_10 = arith.constant 0 : index
    %11 = vector.load %arg5[%c0_9, %c0_10] : memref<16x128xf32, #tpu.memory_space<vmem>>, vector<16x128xf32>
    tpu.vector_store %arg5[%c0_9, %c0_10], %10 {strides = array<i32>} : memref<16x128xf32, #tpu.memory_space<vmem>>, vector<16x128xf32>,
    return
  }
  func.func @transform_0(%arg0: i32) -> (i32, i32) {
    %c0_i32 = arith.constant 0 : i32
    %c0_i32_0 = arith.constant 0 : i32
    %c0_i32_1 = arith.constant 0 : i32
    return %c0_i32, %c0_i32_0 : i32, i32
  }
  func.func @transform_1(%arg0: i32) -> (i32, i32) {
    %c0_i32 = arith.constant 0 : i32
    %c0_i32_0 = arith.constant 0 : i32
    return %arg0, %c0_i32 : i32, i32
  }
  func.func @transform_2(%arg0: i32) -> (i32, i32) {
    %c0_i32 = arith.constant 0 : i32
    %c0_i32_0 = arith.constant 0 : i32
    return %arg0, %c0_i32 : i32, i32
  }
  func.func @transform_3(%arg0: i32) -> (i32, i32) {
    %c0_i32 = arith.constant 0 : i32
    %c0_i32_0 = arith.constant 0 : i32
    %c0_i32_1 = arith.constant 0 : i32
    return %c0_i32, %c0_i32_0 : i32, i32
  }
  func.func @transform_4(%arg0: i32) -> (i32, i32) {
    %c0_i32 = arith.constant 0 : i32
    %c0_i32_0 = arith.constant 0 : i32
    return %arg0, %c0_i32 : i32, i32
  }
}

</mosaic_0001>

<bundles_post_ra>
// kernel: tpu_custom_call.1
= control target key start
LH: loop header
LB: loop body
LE: loop exit
PB: predicated region body
PF: predicated region fallthrough
CT: control target
= control target key end

     0   :  { %9 = vsyncpa [#allocation3], 0  ;;  %s267_s0 = inlined_call_operand.vmem [shape: bf16[16,32], index: 0, kind: input, shape index: {}]   ;;  %s268_s1 = inlined_call_operand.vmem [shape: s8[16,16], index: 1, kind: input, shape index: {}]   ;;  %s269_s2 = inlined_call_operand.vmem [shape: f32[16,1], index: 2, kind: input, shape index: {}]   ;;  %s270_s3 = inlined_call_operand.hbm [shape: f32[32,128], index: 3, kind: input, shape index: {}]   ;;  %s271_s4 = inlined_call_operand.hbm [shape: f32[16,128], index: 4, kind: output, shape index: {}]  }
   0x1   :  { %10 = vsyncpa [#allocation4], 0  ;;  %s21_s17 = sshll.u32 %s270_s3, 4  ;;  %s213_s18 = smov [#allocation2]   ;;  %s22_s17 = int_to_ptr.hbm [resolvable:$true] %s21_s17 }
   0x2   :  { %s23_s19 = sshll.u32 %s213_s18, 4  ;;  %s214_s20 = smov 128   ;;  %s24_s19 = int_to_ptr.vmem [resolvable:$true] %s23_s19 }
   0x3   :  { %s215_s21 = smov 8  }
   0x4   :  { %29 = dma.hbm_to_vmem [thread:$0]  %s22_s17, 512, %s24_s19, [#allocation3], %s214_s20, %s214_s20, %s215_s21  }
   0x5   :  { %209 = dma.done.wait [#allocation3], 512  }
   0x6   :  { %210 = vsyncadd [#allocation3], 4294966784  ;;  %v216_v0 = vmov 0   ;;  %v146_v1 = vld [vmem:[%s267_s0] sm:$0xff]  ;;  %v69_v3 = vld [vmem:[%s269_s2 + $0x8] sm:$0xff]  ;;  %vm50_vm0 = vcmask 130048  }
   0x7   :  { %160 = vset.pattern.permute.xlu0 %v216_v0  ;;  %v148_v2 = vld [vmem:[%s268_s1] sm:$0xf]   ;;  %61 = vmatpush.bf16.msra.mxu0 %v146_v1  ;;  %v87_v10 = vld [vmem:[#allocation2 + $0x18] sm:$0xff]  ;;  %v86_v11 = vld [vmem:[#allocation2 + $0x10] sm:$0xff]  ;;  %vm88_vm1 = vcmask 261120   ;;  %s217_s0 = smov [#allocation5]  }
   0x8   :  { %v149_v4 = vunpack.c.0.s8 %v148_v2  ;;  %v150_v5 = vunpack.c.1.s8 %v148_v2  ;;  %77 = vperm.xlu0 %160, %v69_v3   ;;  %v68_v9 = vld [vmem:[%s269_s2] sm:$0xff]  ;;  %107 = vmatpush.msra.mxu1 %v87_v10  ;;  %v85_v12 = vld [vmem:[#allocation2 + $0x8] sm:$0xff]  ;;  %s124_s1 = sshll.u32 %s217_s0, 4  ;;  %s126_s30 = sshll.u32 %s271_s4, 4  ;;  %s125_s1 = int_to_ptr.vmem [resolvable:$true] %s124_s1  ;;  %s127_s30 = int_to_ptr.hbm [resolvable:$true] %s126_s30 }
   0x9   :  { %151 = vmatpush.msra.mxu2 %v87_v10  ;;  %v84_v13 = vld [vmem:[#allocation2] sm:$0xff] }
   0xa   :  { %v39_v6 = vcvt.s32.f32 %v149_v4  ;;  %v40_v7 = vcvt.s32.f32 %v150_v5  ;;  %108 = vmatpush.msra.mxu1 %v86_v11 }
   0xb   :  { %152 = vmatpush.msra.mxu2 %v86_v11 }
   0xc   :  { %v41_v8 = vpack.c.bf16 %v40_v7, %v39_v6  ;;  %109 = vmatpush.msra.mxu1 %v85_v12 }
   0xd   :  { %153 = vmatpush.msra.mxu2 %v85_v12 }
   0xe   :  { %143 = vmatmul.msk.bf16.vlgmr.msra.gmra.mxu0 %vm50_vm0, %v41_v8  ;;  %110 = vmatpush.msra.mxu1 %v84_v13 }
   0xf   :  { %154 = vmatpush.msra.mxu2 %v84_v13 }
  0x10   :  { %72 = vperm.xlu0 %160, %v68_v9  }
  0x7a   :  { %v78_v14 = vpop.permute.xlu0 %77 }
  0x82   :  { %v73_v15 = vpop.permute.xlu0 %72 }
  0x8b   :  { %v63_v16 = vpop.f32.mrf.mxu0 }
  0x8c   :  { %v80_v17 = vmul.f32 %v73_v15, %v63_v16 }
  0x8e   :  { %v82_v18 = vmax.f32 %v80_v17, 0.0 }
  0x90   :  { %144 = vmatmul.msk.f32.vlgmr.msra.gmra.mxu1 %vm88_vm1, %v82_v18 }
  0x93   :  { %v65_v19 = vpop.f32.mrf.mxu0 }
  0x94   :  { %v81_v20 = vmul.f32 %v78_v14, %v65_v19 }
  0x96   :  { %v83_v21 = vmax.f32 %v81_v20, 0.0 }
  0x98   :  { %145 = vmatmul.msk.f32.vlgmr.msra.gmra.mxu2 %vm88_vm1, %v83_v21 }
 0x10d   :  { %v112_v22 = vpop.f32.mrf.mxu1 }
 0x10e   :  { %118 = vst [vmem:[#allocation5] sm:$0xff] %v112_v22 }
 0x11b   :  { %v115_v23 = vpop.f32.mrf.mxu2 }
 0x11c   :  { %119 = vst [vmem:[#allocation5 + $0x8] sm:$0xff] %v115_v23 }
 0x11d   :  { %132 = dma.vmem_to_hbm [thread:$0]  %s125_s1, 256, %s127_s30, [#allocation4], %s214_s20, %s214_s20, %s215_s21  }
 0x11e   :  { %211 = dma.done.wait [#allocation4], 256  }
 0x11f   :  { %212 = vsyncadd [#allocation4], 4294967040 }
 0x120   :  { %137 = vsyncpa [#allocation3], 1 }
 0x121   :  { %138 = vsyncpa [#allocation4], 1 }

</bundles_post_ra>
